<compile_context>
chip_gen: v5e
topology: v5e:2x2
jax: 0.10.0
libtpu: 0.0.40
codegen_flags: <defaults>
</compile_context>

<pallas_src>
import functools

import jax
import jax.numpy as jnp
from jax.experimental import pallas as pl
from jax.experimental.pallas import tpu as pltpu


# ----------------------------- Pallas kernel ------------------------------- #
def _oa_blend_kernel(dn, df, x_ref, meta_ref, embT_ref, o_ref):
    # x_ref    : (C, TN)  features, channels on sublanes, voxels on lanes
    # meta_ref : (2, TN)  row 0 = v_z, row 1 = fov flag (0/1)
    # embT_ref : (C, 2)   column 0 = free_embed, column 1 = occluded_embed
    x = x_ref[...].astype(jnp.float32)          # (C, TN)
    vz = meta_ref[0:1, :]                       # (1, TN) f32
    fov = meta_ref[1:2, :] != 0.0               # (1, TN) bool
    free = embT_ref[:, 0:1].astype(jnp.float32)   # (C, 1)
    occl = embT_ref[:, 1:2].astype(jnp.float32)   # (C, 1)

    inv = 1.0 / vz                              # narrow (1, TN); unselected inf/NaN is masked below
    in_lo = fov & (vz < dn)                     # -> hard free   (highest priority, applied last in torch)
    in_hi = fov & (vz > df)                     # -> hard occl
    in_b1 = fov & (vz >= dn) & (vz <= 1.0)      # -> blend with free
    in_b2 = fov & (vz > 1.0) & (vz <= df)       # -> blend with occl

    # Per-voxel coefficients so the wide work is just a*x + b*free + c*occl.
    a = jnp.where(in_lo | in_hi, 0.0, jnp.where(in_b1, vz, jnp.where(in_b2, inv, 1.0)))
    b = jnp.where(in_lo, 1.0, jnp.where(in_b1, 1.0 - vz, 0.0))
    c = jnp.where(in_lo, 0.0, jnp.where(in_hi, 1.0, jnp.where(in_b2, 1.0 - inv, 0.0)))

    o_ref[...] = (a * x + b * free + c * occl).astype(o_ref.dtype)


def _pick_tn(N, C, itemsize, vmem_budget_bytes=8 * 1024 * 1024, tn_cap=8192):
    """Largest multiple-of-128 voxel tile whose double-buffered working set fits."""
    # per lane-column bytes: (x tile + out tile) * 2 buffers + meta (2 rows f32) * 2 buffers
    per_col = 4 * C * itemsize + 16
    tn = (vmem_budget_bytes // per_col) // 128 * 128
    tn = max(128, min(tn, tn_cap))
    return N if N <= tn else tn


def occ_aware_blend(x3d, v_z, fov_mask, occ_embed_weight, distance_thr):
    """Occupancy-aware blending on the (bs, c, N) volume (lane axis = voxels).

    x3d: (bs, C, N) features; v_z: (bs, N) f32; fov_mask: (bs, N) bool;
    occ_embed_weight: (2, C) f32 (row 0 = free, row 1 = occluded).
    Returns (bs, C, N) in x3d.dtype.
    """
    bs, C, N = x3d.shape
    dn = float(distance_thr)
    df = 1.0 / float(distance_thr)

    # One combined per-voxel metadata stream: (bs, 2, N).
    meta = jnp.stack(
        [v_z.astype(jnp.float32), fov_mask.astype(jnp.float32)], axis=1)
    embT = jnp.transpose(occ_embed_weight.astype(jnp.float32))      # (C, 2)

    tn = _pick_tn(N, C, jnp.dtype(x3d.dtype).itemsize)
    grid = (bs, pl.cdiv(N, tn))

    return pl.pallas_call(
        functools.partial(_oa_blend_kernel, dn, df),
        out_shape=jax.ShapeDtypeStruct((bs, C, N), x3d.dtype),
        grid=grid,
        in_specs=[
            pl.BlockSpec((None, C, tn), lambda b, j: (b, 0, j)),    # x3d
            pl.BlockSpec((None, 2, tn), lambda b, j: (b, 0, j)),    # meta (vz, fov)
            pl.BlockSpec((C, 2), lambda b, j: (0, 0)),              # embeddings (resident)
        ],
        out_specs=pl.BlockSpec((None, C, tn), lambda b, j: (b, 0, j)),
        input_output_aliases={0: 0},   # pure elementwise update of x3d
        compiler_params=pltpu.CompilerParams(
            dimension_semantics=("parallel", "parallel")),
    )(x3d, meta, embT)


# ------------------------------- JAX glue ----------------------------------- #
def flosp_gather(x2d, projected_pix, fov_mask):
    """FLoSP: gather 2D features at projected pixel coords.

    x2d: (bs, c, h, w), projected_pix: (bs, N, 2) int (x, y), fov_mask: (bs, N) bool.
    Returns (bs, c, N); out-of-FOV voxels get 0 (gather from the appended zero column).
    """
    bs, c, h, w = x2d.shape
    src = x2d.reshape(bs, c, h * w)
    src = jnp.concatenate([src, jnp.zeros((bs, c, 1), src.dtype)], axis=2)
    pix_x = projected_pix[..., 0]
    pix_y = projected_pix[..., 1]
    idx = pix_y * w + pix_x
    idx = jnp.where(fov_mask, idx, h * w)
    idx = jnp.clip(idx, 0, h * w)
    idx = jnp.broadcast_to(idx[:, None, :], (bs, c, idx.shape[-1]))
    return jnp.take_along_axis(src, idx, axis=2)          # (bs, c, N)


def multiscale_flosp(feats, view_scales, projected_pix, fov_mask):
    """MultiScaleFLoSP: sum of FLoSP projections over feature scales."""
    acc = None
    for feat, s in zip(feats, view_scales):
        g = flosp_gather(feat, projected_pix // s, fov_mask)
        acc = g if acc is None else acc + g
    return acc                                             # (bs, c, N)


def occ_aware_flosp(feats, depth, projected_pix, pix_z, fov_mask, occ_embed_weight,
                    scene_shape, view_scales, distance_thr=0.5):
    bs, N = fov_mask.shape
    c = occ_embed_weight.shape[1]

    # MultiScaleFLoSP feature projection -> (bs, c, N)  (already the kernel layout)
    x3d = multiscale_flosp(feats, view_scales, projected_pix, fov_mask)

    # FLoSP on depth -> projected depth per voxel (bs, N)
    v_z_proj = flosp_gather(depth[:, None, :, :], projected_pix, fov_mask)[:, 0, :]
    v_z = (pix_z - v_z_proj) / (v_z_proj + 0.0001)         # (bs, N)

    y = occ_aware_blend(x3d, v_z, fov_mask, occ_embed_weight, distance_thr)

    out = y.reshape(bs, c, *scene_shape)                   # free reshape, no transpose
    out_mask = fov_mask & (v_z >= distance_thr * 0.8)      # (bs, N)
    return out, out_mask


# Pure-JAX reference of the blending, written literally like the PyTorch code.
def _blend_ref(x3d, v_z, fov, emb, dn):
    bs, c, N = x3d.shape
    x = jnp.transpose(x3d, (1, 0, 2)).reshape(c, bs * N)   # (c, M) like torch
    vz = v_z.reshape(-1)
    fv = fov.reshape(-1)
    df = 1.0 / dn
    free = emb[0]
    occl = emb[1]
    y = jnp.where(fv & (vz >= dn) & (vz <= 1.0),
                  x * vz + free[:, None] * (1.0 - vz)[None, :],
                  jnp.where(fv & (vz > 1.0) & (vz <= df),
                            x / vz + occl[:, None] * (1.0 - 1.0 / vz)[None, :],
                            x))
    y = y.T                                                 # (M, c)
    y = jnp.where((fv & (vz > df))[:, None], occl[None, :], y)
    y = jnp.where((fv & (vz < dn))[:, None], free[None, :], y)
    return y.reshape(bs, N, c)


if __name__ == "__main__":
    key = jax.random.PRNGKey(0)
    k0, k1, k2, k3, k4, k5, k6 = jax.random.split(key, 7)

    # Small, module-consistent shapes
    bs = 2
    embed_dims = 32
    scene_size = (8, 8, 4)          # already at volume_scale=1 -> scene_shape
    volume_scale = 1
    scene_shape = tuple(s // volume_scale for s in scene_size)
    N = scene_shape[0] * scene_shape[1] * scene_shape[2]   # 256
    view_scales = (1, 2)
    H = W = 16                       # full-resolution image / depth size
    distance_thr = 0.5

    # Deterministic "parameters": nn.Embedding(2, embed_dims).weight ~ N(0,1)
    occ_embed_weight = jax.random.normal(k0, (2, embed_dims), jnp.float32)

    # Inputs
    feats = [
        jax.random.normal(k1, (bs, embed_dims, H, W), jnp.float32),            # scale 1
        jax.random.normal(k2, (bs, embed_dims, H // 2, W // 2), jnp.float32),  # scale 2
    ]
    depth = jax.random.uniform(k3, (bs, H, W), jnp.float32, 1.0, 10.0)
    px = jax.random.randint(k4, (bs, N, 1), 0, W)
    py = jax.random.randint(k5, (bs, N, 1), 0, H)
    projected_pix = jnp.concatenate([px, py], axis=-1).astype(jnp.int32)        # (bs, N, 2)
    pix_z = jax.random.uniform(k6, (bs, N), jnp.float32, 0.5, 12.0)
    fov_mask = (jax.random.uniform(jax.random.PRNGKey(42), (bs, N)) > 0.3)

    run = jax.jit(functools.partial(occ_aware_flosp,
                                    scene_shape=scene_shape,
                                    view_scales=view_scales,
                                    distance_thr=distance_thr))
    out, out_mask = run(feats, depth, projected_pix, pix_z, fov_mask, occ_embed_weight)
    out = jax.block_until_ready(out)
    out_mask = jax.block_until_ready(out_mask)

    # Sanity check of the Pallas hot path against a pure-JAX (PyTorch-literal) reference.
    x3d = multiscale_flosp(feats, view_scales, projected_pix, fov_mask)
    vzp = flosp_gather(depth[:, None], projected_pix, fov_mask)[:, 0]
    vz = (pix_z - vzp) / (vzp + 0.0001)
    ref = _blend_ref(x3d, vz, fov_mask, occ_embed_weight, distance_thr)         # (bs, N, c)
    ref = ref.reshape(bs, *scene_shape, embed_dims).transpose(0, 4, 1, 2, 3)    # (bs, c, X, Y, Z)
    ref_mask = fov_mask & (vz >= distance_thr * 0.8)

    assert out.shape == (bs, embed_dims, *scene_shape)
    assert out_mask.shape == (bs, N)
    assert jnp.allclose(out, ref, atol=1e-5, rtol=1e-5)
    assert bool(jnp.all(out_mask == ref_mask))

    print("KERNEL_OK")
</pallas_src>

<mosaic_0001>
module attributes {stable_mosaic.version = 11 : i64} {
  func.func @_oa_blend_kernel(%arg0: i32, %arg1: i32, %arg2: memref<1x32x256xf32, #tpu.memory_space<vmem>>, %arg3: memref<1x2x256xf32, #tpu.memory_space<vmem>>, %arg4: memref<32x2xf32, #tpu.memory_space<vmem>>, %arg5: memref<1x32x256xf32, #tpu.memory_space<vmem>>) attributes {dimension_semantics = [#tpu.dimension_semantics<parallel>, #tpu.dimension_semantics<parallel>], iteration_bounds = array<i64: 2, 1>, scalar_prefetch = 0 : i64, scratch_operands = 0 : i64, tpu.core_type = #tpu.core_type<tc>, window_params = [{transform_indices = @transform_0, window_bounds = array<i64: 1, 32, 256>}, {transform_indices = @transform_1, window_bounds = array<i64: 1, 2, 256>}, {pipeline_mode = #tpu.pipeline_mode<synchronous>, transform_indices = @transform_2, window_bounds = array<i64: 32, 2>}, {transform_indices = @transform_3, window_bounds = array<i64: 1, 32, 256>}]} {
    %c0 = arith.constant 0 : index
    %c0_0 = arith.constant 0 : index
    %c0_1 = arith.constant 0 : index
    %0 = vector.load %arg2[%c0, %c0_0, %c0_1] : memref<1x32x256xf32, #tpu.memory_space<vmem>>, vector<1x32x256xf32>
    %1 = vector.shape_cast %0 : vector<1x32x256xf32> to vector<32x256xf32>
    %c0_2 = arith.constant 0 : index
    %c0_3 = arith.constant 0 : index
    %c0_4 = arith.constant 0 : index
    %2 = vector.load %arg3[%c0_2, %c0_3, %c0_4] : memref<1x2x256xf32, #tpu.memory_space<vmem>>, vector<1x1x256xf32>
    %3 = vector.shape_cast %2 : vector<1x1x256xf32> to vector<1x256xf32>
    %c0_5 = arith.constant 0 : index
    %c1 = arith.constant 1 : index
    %c0_6 = arith.constant 0 : index
    %4 = vector.load %arg3[%c0_5, %c1, %c0_6] : memref<1x2x256xf32, #tpu.memory_space<vmem>>, vector<1x1x256xf32>
    %5 = vector.shape_cast %4 : vector<1x1x256xf32> to vector<1x256xf32>
    %cst = arith.constant 0.000000e+00 : f32
    %6 = vector.broadcast %cst : f32 to vector<1x256xf32>
    %7 = arith.cmpf one, %5, %6 : vector<1x256xf32>
    %c0_7 = arith.constant 0 : index
    %c0_8 = arith.constant 0 : index
    %8 = vector.load %arg4[%c0_7, %c0_8] : memref<32x2xf32, #tpu.memory_space<vmem>>, vector<32x1xf32>
    %c0_9 = arith.constant 0 : index
    %c1_10 = arith.constant 1 : index
    %9 = vector.load %arg4[%c0_9, %c1_10] : memref<32x2xf32, #tpu.memory_space<vmem>>, vector<32x1xf32>
    %cst_11 = arith.constant 1.000000e+00 : f32
    %10 = vector.broadcast %cst_11 : f32 to vector<1x256xf32>
    %11 = arith.divf %10, %3 : vector<1x256xf32>
    %cst_12 = arith.constant 5.000000e-01 : f32
    %12 = vector.broadcast %cst_12 : f32 to vector<1x256xf32>
    %13 = arith.cmpf olt, %3, %12 : vector<1x256xf32>
    %14 = arith.andi %7, %13 : vector<1x256xi1>
    %cst_13 = arith.constant 2.000000e+00 : f32
    %15 = vector.broadcast %cst_13 : f32 to vector<1x256xf32>
    %16 = arith.cmpf ogt, %3, %15 : vector<1x256xf32>
    %17 = arith.andi %7, %16 : vector<1x256xi1>
    %cst_14 = arith.constant 5.000000e-01 : f32
    %18 = vector.broadcast %cst_14 : f32 to vector<1x256xf32>
    %19 = arith.cmpf oge, %3, %18 : vector<1x256xf32>
    %20 = arith.andi %7, %19 : vector<1x256xi1>
    %cst_15 = arith.constant 1.000000e+00 : f32
    %21 = vector.broadcast %cst_15 : f32 to vector<1x256xf32>
    %22 = arith.cmpf ole, %3, %21 : vector<1x256xf32>
    %23 = arith.andi %20, %22 : vector<1x256xi1>
    %cst_16 = arith.constant 1.000000e+00 : f32
    %24 = vector.broadcast %cst_16 : f32 to vector<1x256xf32>
    %25 = arith.cmpf ogt, %3, %24 : vector<1x256xf32>
    %26 = arith.andi %7, %25 : vector<1x256xi1>
    %cst_17 = arith.constant 2.000000e+00 : f32
    %27 = vector.broadcast %cst_17 : f32 to vector<1x256xf32>
    %28 = arith.cmpf ole, %3, %27 : vector<1x256xf32>
    %29 = arith.andi %26, %28 : vector<1x256xi1>
    %30 = arith.ori %14, %17 : vector<1x256xi1>
    %cst_18 = arith.constant 1.000000e+00 : f32
    %31 = vector.broadcast %cst_18 : f32 to vector<1x256xf32>
    %32 = arith.select %29, %11, %31 : vector<1x256xi1>, vector<1x256xf32>
    %33 = arith.select %23, %3, %32 : vector<1x256xi1>, vector<1x256xf32>
    %cst_19 = arith.constant 0.000000e+00 : f32
    %34 = vector.broadcast %cst_19 : f32 to vector<1x256xf32>
    %35 = arith.select %30, %34, %33 : vector<1x256xi1>, vector<1x256xf32>
    %cst_20 = arith.constant 1.000000e+00 : f32
    %36 = vector.broadcast %cst_20 : f32 to vector<1x256xf32>
    %37 = arith.subf %36, %3 : vector<1x256xf32>
    %cst_21 = arith.constant 0.000000e+00 : f32
    %38 = vector.broadcast %cst_21 : f32 to vector<1x256xf32>
    %39 = arith.select %23, %37, %38 : vector<1x256xi1>, vector<1x256xf32>
    %cst_22 = arith.constant 1.000000e+00 : f32
    %40 = vector.broadcast %cst_22 : f32 to vector<1x256xf32>
    %41 = arith.select %14, %40, %39 : vector<1x256xi1>, vector<1x256xf32>
    %cst_23 = arith.constant 1.000000e+00 : f32
    %42 = vector.broadcast %cst_23 : f32 to vector<1x256xf32>
    %43 = arith.subf %42, %11 : vector<1x256xf32>
    %cst_24 = arith.constant 0.000000e+00 : f32
    %44 = vector.broadcast %cst_24 : f32 to vector<1x256xf32>
    %45 = arith.select %29, %43, %44 : vector<1x256xi1>, vector<1x256xf32>
    %cst_25 = arith.constant 1.000000e+00 : f32
    %46 = vector.broadcast %cst_25 : f32 to vector<1x256xf32>
    %47 = arith.select %17, %46, %45 : vector<1x256xi1>, vector<1x256xf32>
    %cst_26 = arith.constant 0.000000e+00 : f32
    %48 = vector.broadcast %cst_26 : f32 to vector<1x256xf32>
    %49 = arith.select %14, %48, %47 : vector<1x256xi1>, vector<1x256xf32>
    %50 = vector.broadcast %35 : vector<1x256xf32> to vector<32x256xf32>
    %51 = arith.mulf %50, %1 : vector<32x256xf32>
    %52 = vector.broadcast %41 : vector<1x256xf32> to vector<32x256xf32>
    %53 = vector.broadcast %8 : vector<32x1xf32> to vector<32x256xf32>
    %54 = arith.mulf %52, %53 : vector<32x256xf32>
    %55 = arith.addf %51, %54 : vector<32x256xf32>
    %56 = vector.broadcast %49 : vector<1x256xf32> to vector<32x256xf32>
    %57 = vector.broadcast %9 : vector<32x1xf32> to vector<32x256xf32>
    %58 = arith.mulf %56, %57 : vector<32x256xf32>
    %59 = arith.addf %55, %58 : vector<32x256xf32>
    %c0_27 = arith.constant 0 : index
    %c0_28 = arith.constant 0 : index
    %c0_29 = arith.constant 0 : index
    %60 = vector.load %arg5[%c0_27, %c0_28, %c0_29] : memref<1x32x256xf32, #tpu.memory_space<vmem>>, vector<1x32x256xf32>
    %61 = vector.shape_cast %60 : vector<1x32x256xf32> to vector<32x256xf32>
    %62 = vector.shape_cast %59 : vector<32x256xf32> to vector<1x32x256xf32>
    tpu.vector_store %arg5[%c0_27, %c0_28, %c0_29], %62 {strides = array<i32>} : memref<1x32x256xf32, #tpu.memory_space<vmem>>, vector<1x32x256xf32>,
    return
  }
  func.func @transform_0(%arg0: i32, %arg1: i32) -> (i32, i32, i32) {
    %c0_i32 = arith.constant 0 : i32
    %c0_i32_0 = arith.constant 0 : i32
    return %arg0, %c0_i32, %arg1 : i32, i32, i32
  }
  func.func @transform_1(%arg0: i32, %arg1: i32) -> (i32, i32, i32) {
    %c0_i32 = arith.constant 0 : i32
    %c0_i32_0 = arith.constant 0 : i32
    return %arg0, %c0_i32, %arg1 : i32, i32, i32
  }
  func.func @transform_2(%arg0: i32, %arg1: i32) -> (i32, i32) {
    %c0_i32 = arith.constant 0 : i32
    %c0_i32_0 = arith.constant 0 : i32
    %c0_i32_1 = arith.constant 0 : i32
    return %c0_i32, %c0_i32_0 : i32, i32
  }
  func.func @transform_3(%arg0: i32, %arg1: i32) -> (i32, i32, i32) {
    %c0_i32 = arith.constant 0 : i32
    %c0_i32_0 = arith.constant 0 : i32
    return %arg0, %c0_i32, %arg1 : i32, i32, i32
  }
}

</mosaic_0001>

<bundles_post_ra>
// kernel: occ_aware_flosp.1
= control target key start
LH: loop header
LB: loop body
LE: loop exit
PB: predicated region body
PF: predicated region fallthrough
CT: control target
= control target key end

     0   :  { %s600_s12 = smov 0   ;;  %s602_s13 = smov 0   ;;  %s670_s0 = inlined_call_operand.vmem [shape: f32[2,32,256], index: 0, kind: input, shape index: {}, may-alias: {0,3}]   ;;  %s671_s1 = inlined_call_operand.vmem [shape: f32[2,2,256], index: 1, kind: input, shape index: {}]   ;;  %s672_s2 = inlined_call_operand.vmem [shape: f32[32,2], index: 2, kind: input, shape index: {}]   ;;  %s673_s3 = inlined_call_operand.vmem [shape: f32[2,32,256], index: 3, kind: output, shape index: {}, may-alias: {0,3}]  }
   0x1   :  { %s604_s14 = smov 0  }
   0x2 LB: > { %s25_s15 = sadd.s32 1, %s572_s13  ;;  %p508_p0 = scmp.ge.s32.totalorder %s576_s14, 1  ;;  %s576_s14 = sphi %s604_s14, %s13_s14   ;;  %s572_s13 = sphi %s602_s13, %s675_s13   ;;  %s568_s12 = sphi %s600_s12, %s674_s12  }
   0x3   : > { %p27_p1 = scmp.ge.s32.totalorder %s25_s15, 2  ;;  %p175_p2 = scmp.lt.s32.totalorder %s576_s14, 3 }
   0x5   : > { %s677_s15 = smov (%p27_p1, %s25_s15), 0  ;;  %p176_p3 = pnand %p508_p0, %p175_p2 }
   0x6   : > { %p217_p4 = scmp.lt.s32.totalorder (!%p176_p3), %s568_s12, 1 }
   0x7   : > { %179 = sbr.rel (%p176_p3) target bundleno = 154 (0x9a), region = 32 }
   0xc   : > { %v260_v0 = vld [vmem:[%s672_s2 + $0x10] sm:$0xff]  ;;  %v258_v1 = vld [vmem:[%s672_s2] sm:$0xff]  ;;  %v578_v2 = vmov 0   ;;  %v579_v3 = vmov 1   ;;  %v261_v4 = vld [vmem:[%s672_s2 + $0x18] sm:$0xff]  ;;  %s679_s12 = smov (!%p217_p4, %s568_s12), 1 }
   0xd   : > { %548 = vset.pattern.permute.xlu1 %v578_v2  ;;  %547 = vset.pattern.permute.xlu0 %v578_v2  ;;  %v259_v5 = vld [vmem:[%s672_s2 + $0x8] sm:$0xff]  ;;  %s519_s24 = sshll.u32 %s679_s12, 2  ;;  %s518_s28 = sshll.u32 %s679_s12, 6 }
   0xe   : > { %330 = vperm.xlu1 %548, %v260_v0   ;;  %320 = vperm.xlu0 %547, %v258_v1   ;;  %s234_s27 = scalar_lea.vmem %s671_s1, %s519_s24  ;;  %s224_s4 = scalar_lea.vmem %s670_s0, %s518_s28 }
   0xf   : > { %549 = vset.pattern.permute.xlu2 %v579_v3  ;;  %v254_v6 = vld [vmem:[%s234_s27] ss:$2 sm:$0x3]  ;;  %v515_v12 = vld [vmem:[%s234_s27 + $0x1] ss:$2 sm:$0x3]  ;;  %s651_s7 = scalar_lea.vmem %s673_s3, %s518_s28 }
  0x10   : > { %360 = vperm.xlu2 %549, %v258_v1   ;;  %552 = vrcp.f32 %v254_v6  ;;  %vm267_vm0 = vweird.f32 %v254_v6  ;;  %v273_v11 = vand.u32 2147483648, %v254_v6  ;;  %v271_v14 = vand.u32 2147483647, %v254_v6  ;;  %v246_v30 = vld [vmem:[%s224_s4] sm:$0xff]  ;;  %v247_v31 = vld [vmem:[%s224_s4 + $0x8] sm:$0xff]  ;;  %v252_v47 = vld [vmem:[%s224_s4 + $0x30] sm:$0xff] }
  0x11   : > { %vm257_vm3 = vcmp.ne.f32.partialorder %v515_v12, 0.0  ;;  %vm285_vm4 = vcmp.gt.f32.partialorder %v254_v6, 1.0  ;;  %vm281_vm6 = vcmp.ge.f32.partialorder %v254_v6, 0.5  ;;  %vm287_vm8 = vcmp.le.f32.partialorder %v254_v6, 2.0  ;;  %v253_v48 = vld [vmem:[%s224_s4 + $0x38] sm:$0xff]  ;;  %v248_v49 = vld [vmem:[%s224_s4 + $0x10] sm:$0xff] }
  0x12   : > { %v274_v15 = vor.u32 1.1754944e-38, %v273_v11  ;;  %vm272_vm5 = vcmp.eq.f32.partialorder %v271_v14, 8.507059e+37  ;;  %vm286_vm7 = vmand %vm257_vm3, %vm285_vm4  ;;  %vm277_vm9 = vcmp.lt.f32.partialorder %v254_v6, 0.5  ;;  %vm279_vm10 = vcmp.gt.f32.partialorder %v254_v6, 2.0  ;;  %v249_v50 = vld [vmem:[%s224_s4 + $0x18] sm:$0xff]  ;;  %v250_v53 = vld [vmem:[%s224_s4 + $0x20] sm:$0xff] }
  0x13   : > { %vm282_vm11 = vmand %vm257_vm3, %vm281_vm6  ;;  %vm283_vm12 = vcmp.le.f32.partialorder %v254_v6, 1.0  ;;  %v293_v20 = vsub.f32 1.0, %v254_v6  ;;  %v251_v54 = vld [vmem:[%s224_s4 + $0x28] sm:$0xff] }
  0x14   : > { %vm288_vm13 = vmand %vm286_vm7, %vm287_vm8 }
  0x15   : > { %vm278_vm14 = vmand %vm257_vm3, %vm277_vm9 }
  0x16   : > { %335 = vperm.xlu1 %548, %v261_v4   ;;  %325 = vperm.xlu0 %547, %v259_v5   ;;  %v553_v7 = vpop.eup %552  ;;  %vm280_vm15 = vmand %vm257_vm3, %vm279_vm10 }
  0x17   : > { %v263_v8 = vmul.f32 %v553_v7, %v254_v6  ;;  %vm268_vm1 = vweird.f32 %v553_v7 }
  0x18   : > { %364 = vperm.xlu2 %549, %v259_v5   ;;  %vm269_vm2 = vmor %vm267_vm0, %vm268_vm1 }
  0x19   : > { %v264_v9 = vsub.f32 1.0, %v263_v8  ;;  %vm284_vm0 = vmand %vm282_vm11, %vm283_vm12 }
  0x1a   : > { %vm289_vm1 = vmor %vm278_vm14, %vm280_vm15  ;;  %v294_v23 = vsel %vm284_vm0, %v293_v20, 0.0 }
  0x1b   : > { %v265_v10 = vmul.f32 %v553_v7, %v264_v9  ;;  %v295_v26 = vsel %vm278_vm14, 1.0, %v294_v23 }
  0x1c   : > { %v314_v33 = vperm.slane %v295_v26, 0  ;;  %v315_v34 = vperm.slane %v295_v26, 1 }
  0x1d   : > { %v266_v13 = vadd.f32 %v553_v7, %v265_v10 }
  0x1e   : > { %551 = vset.pattern.permute.xlu1 %v579_v3  ;;  %550 = vset.pattern.permute.xlu0 %v579_v3 }
  0x1f   : > { %372 = vperm.xlu1 %551, %v261_v4   ;;  %368 = vperm.xlu0 %550, %v260_v0   ;;  %v270_v16 = vsel %vm269_vm2, %v553_v7, %v266_v13 }
  0x20   : > { %v275_v17 = vsel %vm272_vm5, %v274_v15, %v270_v16 }
  0x21   : > { %v296_v18 = vsub.f32 1.0, %v275_v17  ;;  %v290_v19 = vsel %vm288_vm13, %v275_v17, 1.0 }
  0x22   : > { %v291_v22 = vsel %vm284_vm0, %v254_v6, %v290_v19 }
  0x23   : > { %v297_v21 = vsel %vm288_vm13, %v296_v18, 0.0  ;;  %v292_v25 = vsel %vm289_vm1, 0.0, %v291_v22 }
  0x24   : > { %v298_v24 = vsel %vm280_vm15, 1.0, %v297_v21  ;;  %v301_v28 = vperm.slane %v292_v25, 0  ;;  %v302_v29 = vperm.slane %v292_v25, 1 }
  0x25   : > { %v299_v27 = vsel %vm278_vm14, 0.0, %v298_v24 }
  0x26   : > { %v355_v35 = vperm.slane %v299_v27, 0  ;;  %v356_v36 = vperm.slane %v299_v27, 1  ;;  %v305_v37 = vmul.f32 %v301_v28, %v246_v30  ;;  %v306_v38 = vmul.f32 %v302_v29, %v247_v31 }
  0x27   : > { %v307_v56 = vmul.f32 %v301_v28, %v248_v49  ;;  %v308_v57 = vmul.f32 %v302_v29, %v249_v50  ;;  %v309_v2 = vmul.f32 %v301_v28, %v250_v53  ;;  %v311_v4 = vmul.f32 %v301_v28, %v252_v47 }
  0x28   : > { %v312_v5 = vmul.f32 %v302_v29, %v253_v48  ;;  %v310_v10 = vmul.f32 %v302_v29, %v251_v54 }
  0x6a   : > { %v361_v32 = vpop.permute.xlu2 %360 }
  0x6b   : > { %v375_v43 = vmul.f32 %v361_v32, %v355_v35  ;;  %v376_v44 = vmul.f32 %v361_v32, %v356_v36 }
  0x72   : > { %v365_v55 = vpop.permute.xlu2 %364 }
  0x73   : > { %v377_v62 = vmul.f32 %v365_v55, %v355_v35  ;;  %v378_v63 = vmul.f32 %v365_v55, %v356_v36 }
  0x80   : > { %v331_v39 = vpop.permute.xlu1 %330  ;;  %v321_v40 = vpop.permute.xlu0 %320 }
  0x81   : > { %v338_v41 = vmul.f32 %v321_v40, %v314_v33  ;;  %v339_v42 = vmul.f32 %v321_v40, %v315_v34  ;;  %v342_v3 = vmul.f32 %v331_v39, %v314_v33  ;;  %v343_v11 = vmul.f32 %v331_v39, %v315_v34 }
  0x83   : > { %v346_v45 = vadd.f32 %v338_v41, %v305_v37  ;;  %v347_v46 = vadd.f32 %v339_v42, %v306_v38  ;;  %v350_v12 = vadd.f32 %v342_v3, %v309_v2  ;;  %v351_v21 = vadd.f32 %v343_v11, %v310_v10 }
  0x85   : > { %v383_v51 = vadd.f32 %v375_v43, %v346_v45  ;;  %v384_v52 = vadd.f32 %v376_v44, %v347_v46 }
  0x87   : > { %391 = vst [vmem:[%s651_s7] sm:$0xff] %v383_v51 }
  0x88   : > { %v336_v58 = vpop.permute.xlu1 %335  ;;  %v326_v59 = vpop.permute.xlu0 %325  ;;  %392 = vst [vmem:[%s651_s7 + $0x8] sm:$0xff] %v384_v52 }
  0x89   : > { %v340_v60 = vmul.f32 %v326_v59, %v314_v33  ;;  %v341_v61 = vmul.f32 %v326_v59, %v315_v34  ;;  %v344_v6 = vmul.f32 %v336_v58, %v314_v33  ;;  %v345_v7 = vmul.f32 %v336_v58, %v315_v34 }
  0x8b   : > { %v348_v0 = vadd.f32 %v340_v60, %v307_v56  ;;  %v349_v1 = vadd.f32 %v341_v61, %v308_v57  ;;  %v352_v13 = vadd.f32 %v344_v6, %v311_v4  ;;  %v353_v14 = vadd.f32 %v345_v7, %v312_v5 }
  0x8d   : > { %v385_v8 = vadd.f32 %v377_v62, %v348_v0  ;;  %v386_v9 = vadd.f32 %v378_v63, %v349_v1 }
  0x8f   : > { %393 = vst [vmem:[%s651_s7 + $0x10] sm:$0xff] %v385_v8 }
  0x90   : > { %394 = vst [vmem:[%s651_s7 + $0x18] sm:$0xff] %v386_v9 }
  0x91   : > { %v373_v15 = vpop.permute.xlu1 %372  ;;  %v369_v16 = vpop.permute.xlu0 %368 }
  0x92   : > { %v381_v17 = vmul.f32 %v373_v15, %v355_v35  ;;  %v382_v18 = vmul.f32 %v373_v15, %v356_v36  ;;  %v379_v19 = vmul.f32 %v369_v16, %v355_v35  ;;  %v380_v20 = vmul.f32 %v369_v16, %v356_v36 }
  0x94   : > { %v389_v22 = vadd.f32 %v381_v17, %v352_v13  ;;  %v390_v23 = vadd.f32 %v382_v18, %v353_v14  ;;  %v387_v24 = vadd.f32 %v379_v19, %v350_v12  ;;  %v388_v25 = vadd.f32 %v380_v20, %v351_v21 }
  0x96   : > { %397 = vst [vmem:[%s651_s7 + $0x30] sm:$0xff] %v389_v22 }
  0x97   : > { %398 = vst [vmem:[%s651_s7 + $0x38] sm:$0xff] %v390_v23 }
  0x98   : > { %395 = vst [vmem:[%s651_s7 + $0x20] sm:$0xff] %v387_v24 }
  0x99   : > { %396 = vst [vmem:[%s651_s7 + $0x28] sm:$0xff] %v388_v25 }
  0x9a PF: > { %s13_s14 = sadd.s32 1, %s576_s14   ;;  %s674_s12 = smov %s572_s13 }
  0x9b   : > { %p10_p5 = scmp.ge.s32.totalorder %s13_s14, 4   ;;  %s675_s13 = smov %s677_s15 }
  0x9d   :  { %12 = sbr.rel (!%p10_p5) target bundleno = 2 (0x2), region = 66 }

</bundles_post_ra>
